<compile_context>
chip_gen: v7x
topology: tpu7x:2x2x1
jax: 0.10.0
libtpu: 0.0.40
codegen_flags: <defaults>
</compile_context>

<pallas_src>
import functools
import math

import jax
import jax.numpy as jnp
from jax.experimental import pallas as pl
from jax.experimental.pallas import tpu as pltpu


_MXU_DTYPE = jnp.bfloat16     # MXU operand dtype; accumulation stays f32
_ACT_DTYPE = jnp.bfloat16     # inter-kernel activation dtype (HBM round trips)


def _vmem_limit_bytes():
    """Generation-aware scoped-VMEM budget (guarded hardware query)."""
    try:
        cap = pltpu.get_tpu_info().vmem_capacity_bytes
        return min(int(cap * 0.85), 100 * 1024 * 1024)   # ~100 MiB v5e/v6e, ~54 MiB v7x
    except Exception:
        return 48 * 1024 * 1024
_VMEM_LIMIT = _vmem_limit_bytes()

# Tile targets: bigger N/K panels where VMEM allows (cuts x re-stream factor).
_TM = 256
if _VMEM_LIMIT >= 80 * 1024 * 1024:      # v5e / v6e (128 MiB physical VMEM)
    _TN, _TK = 512, 1024
else:                                     # v7x (64 MiB physical VMEM)
    _TN, _TK = 256, 512


def _tile(dim, target, align):
    """Largest multiple of `align` dividing `dim` that is <= target, else full dim."""
    if dim <= target:
        return dim
    t = (target // align) * align
    while t >= align:
        if dim % t == 0:
            return t
        t -= align
    return dim


def _pad_rows(x, residual, M, tm):
    """Pad the row dim up to a tile multiple (never fall back to one giant block)."""
    if M <= tm:
        return x, residual, M, M
    Mp = ((M + tm - 1) // tm) * tm
    if Mp != M:
        x = jnp.pad(x, ((0, Mp - M), (0, 0)))
        if residual is not None:
            residual = jnp.pad(residual, ((0, Mp - M), (0, 0)))
    return x, residual, tm, Mp


def _cparams(*dims):
    return pltpu.CompilerParams(dimension_semantics=dims,
                                vmem_limit_bytes=_VMEM_LIMIT)


# ------------------------- tiled linear (K-reduction) -------------------------

def _linear_tiled_kernel(x_ref, w_ref, *rest, has_bias, has_residual, activation):
    refs = list(rest)
    b_ref = refs.pop(0) if has_bias else None
    r_ref = refs.pop(0) if has_residual else None
    o_ref, acc_ref = refs
    k = pl.program_id(2)

    @pl.when(k == 0)
    def _():
        acc_ref[...] = jnp.zeros_like(acc_ref)

    acc_ref[...] += jnp.dot(x_ref[...].astype(_MXU_DTYPE),
                            w_ref[...].astype(_MXU_DTYPE),
                            preferred_element_type=jnp.float32)

    @pl.when(k == pl.num_programs(2) - 1)
    def _():
        y = acc_ref[...]
        if has_bias:
            y = y + b_ref[...].astype(jnp.float32)
        if activation == "quick_gelu":          # CLIP QuickGELU: x * sigmoid(1.702 x)
            y = y * jax.nn.sigmoid(1.702 * y)
        if has_residual:
            y = y + r_ref[...].astype(jnp.float32)
        o_ref[...] = y.astype(o_ref.dtype)


def linear_tiled(x, w, b=None, residual=None, activation="none",
                 out_dtype=None, tm=None, tn=None, tk=None):
    """y = act(x @ w + b) + residual, tiled (M, N, K) with f32 accumulator; bf16 out."""
    out_dtype = _ACT_DTYPE if out_dtype is None else out_dtype
    tm = _TM if tm is None else tm
    tn = _TN if tn is None else tn
    tk = _TK if tk is None else tk
    M, K = x.shape
    N = w.shape[1]
    x, residual, tm, Mp = _pad_rows(x, residual, M, tm)
    tn, tk = _tile(N, tn, 128), _tile(K, tk, 128)
    nk = K // tk

    w_kwargs = {}
    if nk >= 3:   # deep K loop: triple-buffer the weight panel (v5e DMA latency)
        w_kwargs["pipeline_mode"] = pl.Buffered(3)
    in_specs = [pl.BlockSpec((tm, tk), lambda i, j, k: (i, k)),
                pl.BlockSpec((tk, tn), lambda i, j, k: (k, j), **w_kwargs)]
    args = [x, w]
    if b is not None:
        in_specs.append(pl.BlockSpec((1, tn), lambda i, j, k: (0, j)))
        args.append(b.reshape(1, N))
    if residual is not None:
        in_specs.append(pl.BlockSpec((tm, tn), lambda i, j, k: (i, j)))
        args.append(residual)
    kernel = functools.partial(_linear_tiled_kernel, has_bias=b is not None,
                               has_residual=residual is not None,
                               activation=activation)
    out = pl.pallas_call(
        kernel,
        grid=(Mp // tm, N // tn, nk),
        in_specs=in_specs,
        out_specs=pl.BlockSpec((tm, tn), lambda i, j, k: (i, j)),
        out_shape=jax.ShapeDtypeStruct((Mp, N), out_dtype),
        scratch_shapes=[pltpu.VMEM((tm, tn), jnp.float32)],
        compiler_params=_cparams("parallel", "parallel", "arbitrary"),
    )(*args)
    return out if Mp == M else out[:M]


# ------------------------ LayerNorm fused into linear -------------------------

def _ln_linear_kernel(x_ref, g_ref, bt_ref, w_ref, *rest,
                      has_bias, has_residual, activation):
    refs = list(rest)
    b_ref = refs.pop(0) if has_bias else None
    r_ref = refs.pop(0) if has_residual else None
    o_ref, xn_ref = refs

    # LN computed once per row block (j == 0), cached in a bf16 VMEM scratch and
    # reused for every N tile (j axis is "arbitrary" so iteration is in order).
    @pl.when(pl.program_id(1) == 0)
    def _():
        x = x_ref[...].astype(jnp.float32)
        mean = jnp.mean(x, axis=-1, keepdims=True)
        var = jnp.mean(jnp.square(x - mean), axis=-1, keepdims=True)
        xn = (x - mean) * jax.lax.rsqrt(var + 1e-5)
        xn = xn * g_ref[...].astype(jnp.float32) + bt_ref[...].astype(jnp.float32)
        xn_ref[...] = xn.astype(xn_ref.dtype)

    y = jnp.dot(xn_ref[...], w_ref[...].astype(_MXU_DTYPE),
                preferred_element_type=jnp.float32)
    if has_bias:
        y = y + b_ref[...].astype(jnp.float32)
    if activation == "quick_gelu":
        y = y * jax.nn.sigmoid(1.702 * y)
    if has_residual:
        y = y + r_ref[...].astype(jnp.float32)
    o_ref[...] = y.astype(o_ref.dtype)


def ln_linear(x, gamma, beta, w, b=None, residual=None, activation="none",
              out_dtype=None, tm=None, tn=None):
    """y = act(LayerNorm(x) @ w + b) + residual.  K kept whole (LN needs full rows)."""
    out_dtype = _ACT_DTYPE if out_dtype is None else out_dtype
    tm = _TM if tm is None else tm
    tn = _TN if tn is None else tn
    M, K = x.shape
    N = w.shape[1]
    x, residual, tm, Mp = _pad_rows(x, residual, M, tm)
    tn = _tile(N, tn, 128)

    in_specs = [pl.BlockSpec((tm, K), lambda i, j: (i, 0)),
                pl.BlockSpec((1, K), lambda i, j: (0, 0)),
                pl.BlockSpec((1, K), lambda i, j: (0, 0)),
                pl.BlockSpec((K, tn), lambda i, j: (0, j))]
    args = [x, gamma.reshape(1, K), beta.reshape(1, K), w]
    if b is not None:
        in_specs.append(pl.BlockSpec((1, tn), lambda i, j: (0, j)))
        args.append(b.reshape(1, N))
    if residual is not None:
        in_specs.append(pl.BlockSpec((tm, tn), lambda i, j: (i, j)))
        args.append(residual)
    kernel = functools.partial(_ln_linear_kernel, has_bias=b is not None,
                               has_residual=residual is not None,
                               activation=activation)
    out = pl.pallas_call(
        kernel,
        grid=(Mp // tm, N // tn),
        in_specs=in_specs,
        out_specs=pl.BlockSpec((tm, tn), lambda i, j: (i, j)),
        out_shape=jax.ShapeDtypeStruct((Mp, N), out_dtype),
        scratch_shapes=[pltpu.VMEM((tm, K), _MXU_DTYPE)],
        compiler_params=_cparams("parallel", "arbitrary"),
    )(*args)
    return out if Mp == M else out[:M]


# ----------------------- pos-embedding add fused into LN ----------------------

def _add_ln_kernel(x_ref, p_ref, g_ref, b_ref, o_ref):
    x = x_ref[0].astype(jnp.float32) + p_ref[...].astype(jnp.float32)
    mean = jnp.mean(x, axis=-1, keepdims=True)
    var = jnp.mean(jnp.square(x - mean), axis=-1, keepdims=True)
    y = (x - mean) * jax.lax.rsqrt(var + 1e-5)
    o_ref[0] = (y * g_ref[...].astype(jnp.float32)
                + b_ref[...].astype(jnp.float32)).astype(o_ref.dtype)


def add_layernorm(x, pos, gamma, beta):
    """LayerNorm(x + pos) with the positional add fused (x: (B,L,D), pos: (L,D))."""
    B, L, D = x.shape
    return pl.pallas_call(
        _add_ln_kernel,
        grid=(B,),
        in_specs=[pl.BlockSpec((1, L, D), lambda b: (b, 0, 0)),
                  pl.BlockSpec((L, D), lambda b: (0, 0)),
                  pl.BlockSpec((1, D), lambda b: (0, 0)),
                  pl.BlockSpec((1, D), lambda b: (0, 0))],
        out_specs=pl.BlockSpec((1, L, D), lambda b: (b, 0, 0)),
        out_shape=jax.ShapeDtypeStruct((B, L, D), _ACT_DTYPE),
        compiler_params=_cparams("parallel"),
    )(x, pos, gamma.reshape(1, D), beta.reshape(1, D))


# -------------------------- fused multi-head attention ------------------------

def _attention_kernel(q_ref, k_ref, v_ref, o_ref, *, scale, causal):
    q = q_ref[0, 0].astype(_MXU_DTYPE)                    # (L, Hd)
    k = k_ref[0, 0].astype(_MXU_DTYPE)
    v = v_ref[0, 0].astype(_MXU_DTYPE)
    # q @ k^T without materializing the transpose (contract last dims).
    s = jax.lax.dot_general(q, k, (((1,), (1,)), ((), ())),
                            preferred_element_type=jnp.float32) * scale   # (L, L) f32
    if causal:
        L = s.shape[-1]
        row = jax.lax.broadcasted_iota(jnp.int32, (L, L), 0)
        col = jax.lax.broadcasted_iota(jnp.int32, (L, L), 1)
        s = jnp.where(col > row, -1e9, s)
    m = jnp.max(s, axis=-1, keepdims=True)
    e = jnp.exp(s - m)
    p = e * pl.reciprocal(jnp.sum(e, axis=-1, keepdims=True), approx=True)
    out = jnp.dot(p.astype(_MXU_DTYPE), v, preferred_element_type=jnp.float32)
    o_ref[0, 0] = out.astype(o_ref.dtype)


def fused_attention(q, k, v, causal):
    """q/k/v: (B, H, L, Hd) -> (B, H, L, Hd); grid over (batch, head).

    Per-step temporaries are bounded by L^2 (fits v7x VMEM even for ViT-L) and
    B*H grid points balance across both TensorCores."""
    B, H, L, Hd = q.shape
    kernel = functools.partial(_attention_kernel, scale=Hd ** -0.5, causal=causal)
    spec = pl.BlockSpec((1, 1, L, Hd), lambda b, h: (b, h, 0, 0))
    return pl.pallas_call(
        kernel,
        grid=(B, H),
        in_specs=[spec, spec, spec],
        out_specs=spec,
        out_shape=jax.ShapeDtypeStruct((B, H, L, Hd), _ACT_DTYPE),
        compiler_params=_cparams("parallel", "parallel"),
    )(q, k, v)


# ------------------------------- CLIP logits ----------------------------------

def _clip_logits_kernel(scale_ref, img_ref, txt_ref, o_ref):
    img = img_ref[...].astype(jnp.float32)
    txt = txt_ref[...].astype(jnp.float32)
    img = img * jax.lax.rsqrt(jnp.sum(img * img, axis=-1, keepdims=True))
    txt = txt * jax.lax.rsqrt(jnp.sum(txt * txt, axis=-1, keepdims=True))
    # contract last dims of both operands -> no in-VMEM transpose of txt
    logits = jax.lax.dot_general(img, txt, (((1,), (1,)), ((), ())),
                                 preferred_element_type=jnp.float32)
    o_ref[...] = (scale_ref[0] * logits).astype(o_ref.dtype)


def clip_logits(logit_scale, image_features, text_features, tb=256):
    # TODO(synk): for large class counts pad C to a multiple of 128 so the (tb, C)
    # output tile is lane-dense.
    B, E = image_features.shape
    C = text_features.shape[0]
    image_features, _, tb, Bp = _pad_rows(image_features, None, B, tb)
    scale = jnp.exp(jnp.asarray(logit_scale, jnp.float32)).reshape(1)  # logit_scale.exp()
    out = pl.pallas_call(
        _clip_logits_kernel,
        grid=(Bp // tb,),
        in_specs=[pl.BlockSpec(memory_space=pltpu.MemorySpace.SMEM),   # scalar in SMEM
                  pl.BlockSpec((tb, E), lambda i: (i, 0)),
                  pl.BlockSpec((C, E), lambda i: (0, 0))],
        out_specs=pl.BlockSpec((tb, C), lambda i: (i, 0)),
        out_shape=jax.ShapeDtypeStruct((Bp, C), jnp.float32),
        compiler_params=_cparams("parallel"),
    )(scale, image_features, text_features)
    return out if Bp == B else out[:B]


# --------------------------- transformer pieces -------------------------------

def residual_attention_block(x, p, n_heads, causal=False):
    B, L, D = x.shape
    Hd = D // n_heads
    x2 = x.reshape(B * L, D)
    # LN1 fused into the QKV projection (normalized rows cached across N tiles)
    qkv = ln_linear(x2, p["ln_1_g"], p["ln_1_b"], p["w_qkv"], p["b_qkv"])    # (B*L, 3D) bf16
    # Head split (glue; bf16 halves the transpose traffic vs. the f32 version).
    # TODO(synk): keep q/k/v lane-dense (B, L, D) end-to-end and split heads inside
    # the attention kernel (needs unaligned lane slicing for sub-128 head dims).
    qkv = qkv.reshape(B, L, 3, n_heads, Hd).transpose(2, 0, 3, 1, 4)         # (3,B,H,L,Hd)
    attn = fused_attention(qkv[0], qkv[1], qkv[2], causal=causal)            # (B,H,L,Hd)
    attn = attn.transpose(0, 2, 1, 3).reshape(B * L, D)
    # out-projection with residual add fused into the epilogue
    x2 = linear_tiled(attn, p["w_out"], p["b_out"], residual=x2)
    # LN2 fused into MLP w1 (+QuickGELU); residual fused into w2 epilogue
    h = ln_linear(x2, p["ln_2_g"], p["ln_2_b"], p["mlp_w1"], p["mlp_b1"],
                  activation="quick_gelu")
    x2 = linear_tiled(h, p["mlp_w2"], p["mlp_b2"], residual=x2)
    return x2.reshape(B, L, D)


# ------------------------------- model forward --------------------------------

def encode_image(image, h, w, vp, cfg):
    """CLIP VisionTransformer forward.  image: (B, C, H, W) NCHW."""
    B, C, H, W = image.shape
    assert h == H and w == W and H == cfg["image_size"] and W == cfg["image_size"]
    P, D = cfg["patch"], cfg["vision_width"]
    gh, gw = H // P, W // P
    # patchify (glue): stride=kernel=patch conv1 == matmul on flattened patches
    patches = image.reshape(B, C, gh, P, gw, P).transpose(0, 2, 4, 1, 3, 5)
    patches = patches.reshape(B * gh * gw, C * P * P)
    x = linear_tiled(patches, vp["conv_w"])                                   # conv1 (no bias)
    x = x.reshape(B, gh * gw, D)
    cls = jnp.broadcast_to(vp["class_embedding"].astype(x.dtype).reshape(1, 1, D), (B, 1, D))
    x = jnp.concatenate([cls, x], axis=1)                                     # (B, 1+np, D)
    # pos-embedding add fused into ln_pre
    x = add_layernorm(x, vp["pos_embedding"], vp["ln_pre_g"], vp["ln_pre_b"])
    for blk in vp["blocks"]:
        x = residual_attention_block(x, blk, cfg["vision_heads"], causal=False)
    pooled = x[:, 0, :]                                                       # CLS token
    # ln_post fused into the output projection
    return ln_linear(pooled, vp["ln_post_g"], vp["ln_post_b"], vp["proj"])    # (B, embed)


def prompt_learner_forward(plp, n_cls):
    ctx = plp["ctx"]                                   # (n_ctx, D) generic context
    if ctx.ndim == 2:
        ctx = jnp.broadcast_to(ctx[None, :, :], (n_cls,) + ctx.shape)
    # class_token_position == 'end'
    return jnp.concatenate([plp["token_prefix"], ctx, plp["token_suffix"]], axis=1)


def encode_text(prompts, tokenized_prompts, tp, cfg):
    """TextEncoder forward.  prompts: (n_cls, L, D)."""
    n_cls, L, D = prompts.shape
    # TODO(synk): fold this (tiny) pos add into the first block's LN->QKV kernel.
    x = (prompts + tp["pos_embedding"][None, :, :]).astype(_ACT_DTYPE)
    # (PyTorch's permute(1,0,2) is only nn.MultiheadAttention's seq-first convention)
    for blk in tp["blocks"]:
        x = residual_attention_block(x, blk, cfg["text_heads"], causal=True)
    # ln_final is row-wise, so gather-then-LN == LN-then-gather; gather first (cheaper),
    # then fuse ln_final into the text projection.
    eot = jnp.argmax(tokenized_prompts, axis=-1)
    pooled = x[jnp.arange(n_cls), eot]                                        # (n_cls, D)
    return ln_linear(pooled, tp["ln_final_g"], tp["ln_final_b"], tp["text_projection"])


def custom_clip_forward(image, params, cfg):
    h, w = image.shape[-2:]
    image_features = encode_image(image.astype(jnp.float32), h, w, params["visual"], cfg)
    prompts = prompt_learner_forward(params["prompt_learner"], cfg["n_cls"])
    text_features = encode_text(prompts, params["tokenized_prompts"], params["text"], cfg)
    return clip_logits(params["logit_scale"], image_features, text_features)


# ----------------------------- deterministic init -----------------------------

def _normal(key, shape, std=0.02, dtype=jnp.float32):
    return (std * jax.random.normal(key, shape, jnp.float32)).astype(dtype)


def _init_block(key, width):
    ks = jax.random.split(key, 4)
    return dict(
        ln_1_g=jnp.ones((width,), jnp.float32), ln_1_b=jnp.zeros((width,), jnp.float32),
        w_qkv=_normal(ks[0], (width, 3 * width), dtype=_MXU_DTYPE),
        b_qkv=jnp.zeros((3 * width,), jnp.float32),
        w_out=_normal(ks[1], (width, width), dtype=_MXU_DTYPE),
        b_out=jnp.zeros((width,), jnp.float32),
        ln_2_g=jnp.ones((width,), jnp.float32), ln_2_b=jnp.zeros((width,), jnp.float32),
        mlp_w1=_normal(ks[2], (width, 4 * width), dtype=_MXU_DTYPE),
        mlp_b1=jnp.zeros((4 * width,), jnp.float32),
        mlp_w2=_normal(ks[3], (4 * width, width), dtype=_MXU_DTYPE),
        mlp_b2=jnp.zeros((width,), jnp.float32),
    )


def init_params(key, cfg):
    kv, kt, kp, _ = jax.random.split(key, 4)
    P, C = cfg["patch"], cfg["in_chans"]
    Dv, Dt, E = cfg["vision_width"], cfg["text_width"], cfg["embed_dim"]
    n_patches = (cfg["image_size"] // P) ** 2
    L = cfg["context_length"]
    n_cls, n_ctx = cfg["n_cls"], cfg["n_ctx"]

    kvs = jax.random.split(kv, 6 + cfg["vision_layers"])
    visual = dict(
        conv_w=_normal(kvs[0], (C * P * P, Dv), dtype=_MXU_DTYPE),
        class_embedding=_normal(kvs[1], (Dv,)),
        pos_embedding=_normal(kvs[2], (n_patches + 1, Dv)),
        ln_pre_g=jnp.ones((Dv,), jnp.float32), ln_pre_b=jnp.zeros((Dv,), jnp.float32),
        ln_post_g=jnp.ones((Dv,), jnp.float32), ln_post_b=jnp.zeros((Dv,), jnp.float32),
        proj=_normal(kvs[3], (Dv, E), dtype=_MXU_DTYPE),
        blocks=[_init_block(kvs[6 + i], Dv) for i in range(cfg["vision_layers"])],
    )

    kts = jax.random.split(kt, 4 + cfg["text_layers"])
    text = dict(
        pos_embedding=_normal(kts[0], (L, Dt)),
        ln_final_g=jnp.ones((Dt,), jnp.float32), ln_final_b=jnp.zeros((Dt,), jnp.float32),
        text_projection=_normal(kts[1], (Dt, E), dtype=_MXU_DTYPE),
        blocks=[_init_block(kts[4 + i], Dt) for i in range(cfg["text_layers"])],
    )

    kps = jax.random.split(kp, 3)
    prompt_learner = dict(
        ctx=_normal(kps[0], (n_ctx, Dt)),                          # generic context (CSC=False)
        token_prefix=_normal(kps[1], (n_cls, 1, Dt)),              # frozen SOT embedding
        token_suffix=_normal(kps[2], (n_cls, L - 1 - n_ctx, Dt)),  # frozen class/EOT/pad embeds
    )

    # tokenized prompts: [SOT] + n_ctx ctx tokens + name tokens + '.' + [EOT] + pad
    # EOT id (49407) is the max id so argmax(dim=-1) finds the EOT position, as in CLIP.
    name_lens = [1 + (i % 3) for i in range(n_cls)]
    rows = []
    for i, nl in enumerate(name_lens):
        row = [49406] + [400 + j for j in range(n_ctx)] + [600 + i] * nl + [269, 49407]
        row = row + [0] * (L - len(row))
        rows.append(row)
    tokenized_prompts = jnp.array(rows, jnp.int32)

    return dict(visual=visual, text=text, prompt_learner=prompt_learner,
                tokenized_prompts=tokenized_prompts,
                logit_scale=jnp.float32(math.log(1.0 / 0.07)))


# ------------------------------------ main -------------------------------------

if __name__ == "__main__":
    cfg = dict(image_size=16, patch=8, in_chans=3,
               vision_width=32, vision_heads=4, vision_layers=2,
               text_width=32, text_heads=4, text_layers=2,
               embed_dim=32, context_length=12, n_ctx=4, n_cls=3)

    key = jax.random.PRNGKey(0)
    params = init_params(key, cfg)
    image = jax.random.normal(jax.random.fold_in(key, 999), (2, 3, 16, 16), jnp.float32)

    logits = custom_clip_forward(image, params, cfg)
    logits = jax.block_until_ready(logits)
    assert logits.shape == (2, cfg["n_cls"]) and logits.dtype == jnp.float32
    assert bool(jnp.all(jnp.isfinite(logits)))
    print("KERNEL_OK")
</pallas_src>

<mosaic_0001>
module attributes {stable_mosaic.version = 11 : i64} {
  func.func @_linear_tiled_kernel(%arg0: i32, %arg1: i32, %arg2: i32, %arg3: memref<8x192xf32, #tpu.memory_space<vmem>>, %arg4: memref<192x32xbf16, #tpu.memory_space<vmem>>, %arg5: memref<8x32xbf16, #tpu.memory_space<vmem>>, %arg6: memref<8x32xf32, #tpu.memory_space<vmem>>) attributes {dimension_semantics = [#tpu.dimension_semantics<parallel>, #tpu.dimension_semantics<parallel>, #tpu.dimension_semantics<arbitrary>], iteration_bounds = array<i64: 1, 1, 1>, scalar_prefetch = 0 : i64, scratch_operands = 1 : i64, tpu.core_type = #tpu.core_type<tc>, window_params = [{transform_indices = @transform_0, window_bounds = array<i64: 8, 192>}, {transform_indices = @transform_1, window_bounds = array<i64: 192, 32>}, {transform_indices = @transform_2, window_bounds = array<i64: 8, 32>}]} {
    %c0_i32 = arith.constant 0 : i32
    %0 = arith.cmpi eq, %arg2, %c0_i32 : i32
    %1 = arith.extui %0 : i1 to i32
    %c0_i32_0 = arith.constant 0 : i32
    %2 = arith.cmpi ne, %1, %c0_i32_0 : i32
    scf.if %2 {
      %cst_10 = arith.constant 0.000000e+00 : f32
      %13 = vector.broadcast %cst_10 : f32 to vector<8x32xf32>
      %c0_11 = arith.constant 0 : index
      %c0_12 = arith.constant 0 : index
      %14 = vector.load %arg6[%c0_11, %c0_12] : memref<8x32xf32, #tpu.memory_space<vmem>>, vector<8x32xf32>
      tpu.vector_store %arg6[%c0_11, %c0_12], %13 {strides = array<i32>} : memref<8x32xf32, #tpu.memory_space<vmem>>, vector<8x32xf32>,
    } else {
    }
    %c0 = arith.constant 0 : index
    %c0_1 = arith.constant 0 : index
    %3 = vector.load %arg6[%c0, %c0_1] : memref<8x32xf32, #tpu.memory_space<vmem>>, vector<8x32xf32>
    %c0_2 = arith.constant 0 : index
    %c0_3 = arith.constant 0 : index
    %4 = vector.load %arg3[%c0_2, %c0_3] : memref<8x192xf32, #tpu.memory_space<vmem>>, vector<8x192xf32>
    %5 = arith.truncf %4 : vector<8x192xf32> to vector<8x192xbf16>
    %c0_4 = arith.constant 0 : index
    %c0_5 = arith.constant 0 : index
    %6 = vector.load %arg4[%c0_4, %c0_5] : memref<192x32xbf16, #tpu.memory_space<vmem>>, vector<192x32xbf16>
    %cst = arith.constant dense<0.000000e+00> : vector<8x32xf32>
    %7 = tpu.matmul %5, %6, %cst {dimension_numbers = #tpu.dot_dimension_numbers<[1], [0], [0], [1], [0, 0, 1, 1], [], []>} : vector<8x192xbf16>, vector<192x32xbf16>, vector<8x32xf32> -> vector<8x32xf32>
    %8 = arith.addf %3, %7 : vector<8x32xf32>
    %c0_6 = arith.constant 0 : index
    %c0_7 = arith.constant 0 : index
    %9 = vector.load %arg6[%c0_6, %c0_7] : memref<8x32xf32, #tpu.memory_space<vmem>>, vector<8x32xf32>
    tpu.vector_store %arg6[%c0_6, %c0_7], %8 {strides = array<i32>} : memref<8x32xf32, #tpu.memory_space<vmem>>, vector<8x32xf32>,
    %c0_i32_8 = arith.constant 0 : i32
    %10 = arith.cmpi eq, %arg2, %c0_i32_8 : i32
    %11 = arith.extui %10 : i1 to i32
    %c0_i32_9 = arith.constant 0 : i32
    %12 = arith.cmpi ne, %11, %c0_i32_9 : i32
    scf.if %12 {
      %c0_10 = arith.constant 0 : index
      %c0_11 = arith.constant 0 : index
      %13 = vector.load %arg6[%c0_10, %c0_11] : memref<8x32xf32, #tpu.memory_space<vmem>>, vector<8x32xf32>
      %14 = arith.truncf %13 : vector<8x32xf32> to vector<8x32xbf16>
      %c0_12 = arith.constant 0 : index
      %c0_13 = arith.constant 0 : index
      %15 = vector.load %arg5[%c0_12, %c0_13] : memref<8x32xbf16, #tpu.memory_space<vmem>>, vector<8x32xbf16>
      tpu.vector_store %arg5[%c0_12, %c0_13], %14 {strides = array<i32>} : memref<8x32xbf16, #tpu.memory_space<vmem>>, vector<8x32xbf16>,
    } else {
    }
    return
  }
  func.func @transform_0(%arg0: i32, %arg1: i32, %arg2: i32) -> (i32, i32) {
    %c0_i32 = arith.constant 0 : i32
    return %arg0, %arg2 : i32, i32
  }
  func.func @transform_1(%arg0: i32, %arg1: i32, %arg2: i32) -> (i32, i32) {
    %c0_i32 = arith.constant 0 : i32
    return %arg2, %arg1 : i32, i32
  }
  func.func @transform_2(%arg0: i32, %arg1: i32, %arg2: i32) -> (i32, i32) {
    %c0_i32 = arith.constant 0 : i32
    return %arg0, %arg1 : i32, i32
  }
}

</mosaic_0001>

<bundles_post_ra>
// kernel: tpu_custom_call.1
= control target key start
LH: loop header
LB: loop body
LE: loop exit
PB: predicated region body
PF: predicated region fallthrough
CT: control target
= control target key end

     0   :  { %v240_v1 = vmov 0   ;;  %vm17_vm0 = vcmask 261120   ;;  %v241_v3 = vmov 0.0   ;;  %vm120_vm1 = vcmask 523264   ;;  %s314_s0 = inlined_call_operand.vmem [shape: f32[8,192], index: 0, kind: input, shape index: {}]   ;;  %s315_s1 = inlined_call_operand.vmem [shape: bf16[192,32], index: 1, kind: input, shape index: {}]   ;;  %s316_s2 = inlined_call_operand.hbm [shape: bf16[8,32], index: 2, kind: output, shape index: {}]  }
   0x1   :  { %v204_v0 = vld [vmem:[%s315_s1] sm:$0xff]   ;;  %124 = vmatprep.subr.bf16.mxu0 %v240_v1  ;;  %v205_v2 = vld [vmem:[%s315_s1 + $0x8] sm:$0xff]   ;;  %18 = vst.msk [vmem:[#allocation2] sm:$0xff] %vm17_vm0, %v241_v3  ;;  %v206_v4 = vld [vmem:[%s315_s1 + $0x10] sm:$0xff]  }
   0x2   :  { %125 = vmatpush1.bf16.msra.mxu0 %v204_v0  ;;  %v207_v5 = vld [vmem:[%s315_s1 + $0x18] sm:$0xff]   ;;  %v21_v6 = vld [vmem:[%s314_s0 + $0x8] sm:$0xff] }
   0x3   :  { %126 = vmatprep.subr.bf16.mxu0 %v240_v1  ;;  %v23_v7 = vpack.c.bf16 %v21_v6, %v21_v6 }
   0x6   :  { %127 = vmatpush1.bf16.msra.mxu0 %v205_v2 }
   0x7   :  { %128 = vmatprep.subr.bf16.mxu0 %v240_v1 }
   0xa   :  { %129 = vmatpush1.bf16.msra.mxu0 %v206_v4 }
   0xb   :  { %130 = vmatprep.subr.bf16.mxu0 %v240_v1 }
   0xc   :  { %7 = vsyncpa [#allocation4], 0  ;;  %v208_v8 = vld [vmem:[%s315_s1 + $0x20] sm:$0xff]   ;;  %200 = vmatprep.mubr.msk.bf16.mxu0 %vm120_vm1, %v23_v7  ;;  %v209_v9 = vld [vmem:[%s315_s1 + $0x28] sm:$0xff]   ;;  %s242_s9 = smov [#allocation3]   ;;  %vm172_vm2 = vcmask 257024  }
   0xd   :  { %v210_v10 = vld [vmem:[%s315_s1 + $0x30] sm:$0xff]   ;;  %v211_v11 = vld [vmem:[%s315_s1 + $0x38] sm:$0xff]   ;;  %v212_v12 = vld [vmem:[%s315_s1 + $0x40] sm:$0xff]   ;;  %s180_s10 = sshll.u32 %s242_s9, 4  ;;  %s181_s10 = int_to_ptr.vmem [resolvable:$true] %s180_s10 }
   0xe   :  { %131 = vmatpush1.bf16.msra.mxu0 %v207_v5  ;;  %v213_v13 = vld [vmem:[%s315_s1 + $0x48] sm:$0xff]   ;;  %v214_v14 = vld [vmem:[%s315_s1 + $0x50] sm:$0xff]   ;;  %v215_v15 = vld [vmem:[%s315_s1 + $0x58] sm:$0xff]   ;;  %p221_p1 = scmp.lt.s32.totalorder %s181_s10, %s181_s10 }
   0xf   :  { %132 = vmatprep.subr.bf16.mxu0 %v240_v1  ;;  %v20_v16 = vld [vmem:[%s314_s0] sm:$0xff]  ;;  %s216_s0 = scalar_lea.vmem %s181_s10, 64 }
  0x10   :  { %v22_v17 = vpack.c.bf16 %v20_v16, %v20_v16  ;;  %v19_v18 = vld [vmem:[#allocation2] sm:$0xff]  ;;  %p217_p0 = scmp.ne.s32.totalorder %s181_s10, %s216_s0  ;;  %p222_p2 = scmp.lt.s32.totalorder %s216_s0, %s216_s0 }
  0x12   :  { %133 = vmatpush1.bf16.msra.mxu0 %v208_v8  ;;  %p223_p3 = por %p222_p2, %p221_p1 }
  0x13   :  { %134 = vmatprep.subr.bf16.mxu0 %v240_v1 }
  0x14   :  { %p224_p4 = pnand %p223_p3, %p217_p0 }
  0x16   :  { %135 = vmatpush1.bf16.msra.mxu0 %v209_v9 }
  0x17   :  { %136 = vmatprep.subr.bf16.mxu0 %v240_v1 }
  0x1a   :  { %137 = vmatpush1.bf16.msra.mxu0 %v210_v10 }
  0x1b   :  { %138 = vmatprep.subr.bf16.mxu0 %v240_v1 }
  0x1e   :  { %139 = vmatpush1.bf16.msra.mxu0 %v211_v11 }
  0x1f   :  { %140 = vmatprep.subr.bf16.mxu0 %v240_v1 }
  0x22   :  { %141 = vmatpush1.bf16.msra.mxu0 %v212_v12 }
  0x23   :  { %142 = vmatprep.subr.bf16.mxu0 %v240_v1 }
  0x26   :  { %143 = vmatpush1.bf16.msra.mxu0 %v213_v13 }
  0x27   :  { %144 = vmatprep.subr.bf16.mxu0 %v240_v1 }
  0x2a   :  { %145 = vmatpush1.bf16.msra.mxu0 %v214_v14 }
  0x2b   :  { %146 = vmatprep.subr.bf16.mxu0 %v240_v1 }
  0x2e   :  { %147 = vmatpush1.bf16.msra.mxu0 %v215_v15 }
  0x31   :  { %157 = vmatmul.mubr.bf16.vlgmr.msra.gmra.mrb[0].mxu0 %v22_v17 }
 0x104   :  { %v158_v19 = vpop.f32.mrb[0].mxu0 }
 0x105   :  { %v164_v20 = vadd.f32 %v158_v19, %v19_v18  ;;  %v160_v21 = vpop.f32.mrb[1].mxu0 }
 0x106   :  { %v161_v22 = vpop.f32.mrb[2].mxu0 }
 0x107   :  { %166 = vst.msk [vmem:[#allocation2] sm:$0xff] %vm17_vm0, %v164_v20  ;;  %v162_v23 = vpop.f32.mrb[3].mxu0 }
 0x10e   :  { %v170_v24 = vld [vmem:[#allocation2] sm:$0xff] }
 0x10f   :  { %v171_v25 = vpack.c.bf16 %v170_v24, %v170_v24 }
 0x111   :  { %173 = vst.msk [vmem:[#allocation3] sm:$0xf] %vm172_vm2, %v171_v25 }
 0x112   :  { %227 = shalt.err (!%p224_p4)
}
 0x113   :  { %s228_s12 = scalar_lea.hbm %s316_s2, 64 }
 0x114   :  { %p229_p5 = scmp.ne.s32.totalorder %s316_s2, %s228_s12  ;;  %p232_p6 = scmp.lt.u32.totalorder %s228_s12, %s316_s2 }
 0x116   :  { %p234_p7 = pnand %p232_p6, %p229_p5 }
 0x118   :  { %237 = shalt.err (!%p234_p7)
}
 0x119   :  { %183 = dma.vmem_to_hbm [thread:$0]  %s181_s10, 64, %s316_s2, [#allocation4]  }
 0x11a   :  { %238 = dma.done.wait [#allocation4], 64  }
 0x11b   :  { %239 = vsyncadd [#allocation4], 4294967232 }
 0x11c   :  { %187 = vsyncpa [#allocation4], 1 }

</bundles_post_ra>
